<compile_context>
chip_gen: v5e
topology: v5e:2x2
jax: 0.10.0
libtpu: 0.0.40
codegen_flags: <defaults>
</compile_context>

<pallas_src>
import functools

import jax
import jax.numpy as jnp
from jax.experimental import pallas as pl
from jax.experimental.pallas import tpu as pltpu

LANES = 128
SUB = 8                                   # f32 sublane tile; accumulator is (SUB, LANES)
_SMALL_N = 1024                           # below this, plain jnp beats a pallas_call
_TARGET_BLOCK_BYTES = 4 * 1024 * 1024     # per input per grid step


def _num_tensorcores():
    """2 TensorCores per chip on v7x-class devices, else 1 (v5e/v6e)."""
    try:
        kind = jax.devices()[0].device_kind.lower()
    except Exception:
        return 1
    return 2 if ("v7" in kind or "7x" in kind) else 1


def _sq_diff_sum_kernel(a_ref, b_ref, o_ref, *, block_rows, per_core, rows,
                        full_blocks, needs_mask):
    c = pl.program_id(0)          # core axis (CORE_PARALLEL on v7x, size 1 otherwise)
    j = pl.program_id(1)          # streaming / reduction axis ("arbitrary")

    @pl.when(j == 0)
    def _():
        o_ref[...] = jnp.zeros_like(o_ref)

    d = a_ref[...].astype(jnp.float32) - b_ref[...].astype(jnp.float32)
    sq = d * d

    def _accumulate(vals):
        # (block_rows,128) -> (8,128): pure elementwise vreg adds on the VPU.
        # The final 8x128 -> scalar reduce happens once in the wrapper.
        o_ref[...] += vals.reshape(-1, SUB, LANES).sum(axis=0)[None]

    if not needs_mask:
        _accumulate(sq)
    else:
        idx = c * per_core + j    # UNCLAMPED global block index

        @pl.when(idx < full_blocks)
        def _():                  # hot path: fully in-range block, no mask work
            _accumulate(sq)

        @pl.when(idx >= full_blocks)
        def _():                  # last partial block and/or clamped duplicates
            row_in_block = jax.lax.broadcasted_iota(jnp.int32, sq.shape, 0)
            global_row = idx * block_rows + row_in_block
            # jnp.where (select, not multiply) so Pallas-padded / clamped
            # garbage rows can never leak NaN/Inf into the sum.
            _accumulate(jnp.where(global_row < rows, sq, 0.0))


def rmse(output, target, *, block_rows=None, num_cores=None):
    """sqrt(mean((output - target)^2)), accumulated in float32."""
    assert output.shape == target.shape, "output/target shapes must match"
    n = output.size

    a = jnp.ravel(output)
    b = jnp.ravel(target)

    # Tiny-input fast path: pallas_call launch/pipeline overhead dominates.
    if n < _SMALL_N:
        d = a.astype(jnp.float32) - b.astype(jnp.float32)
        return jnp.sqrt(jnp.mean(d * d))

    # Ragged tail (< 128 elements): summed in plain JAX; the kernel only sees
    # the 128-aligned prefix.  Avoids the old full-array jnp.pad copy in HBM.
    # TODO(synk): a manual-DMA (pl.ANY) path would make the ragged prefix
    # fully zero-copy; not worth the complexity for this module's shapes.
    n_aligned = (n // LANES) * LANES
    if n_aligned != n:
        ta = a[n_aligned:].astype(jnp.float32)
        tb = b[n_aligned:].astype(jnp.float32)
        tail_sum = jnp.sum((ta - tb) * (ta - tb))
        a = a[:n_aligned]
        b = b[:n_aligned]
    else:
        tail_sum = jnp.float32(0.0)

    rows = n_aligned // LANES
    a = a.reshape(rows, LANES)    # contiguous reshape: no copy, no cast
    b = b.reshape(rows, LANES)

    # dtype-aware block sizing: ~4 MiB of each input per grid step; sublane
    # extent aligned to the packed-dtype tile (8 f32 / 16 bf16 / 32 int8).
    itemsize = max(jnp.dtype(output.dtype).itemsize,
                   jnp.dtype(target.dtype).itemsize)
    sub_tile = max(SUB, 32 // itemsize)
    if block_rows is None:
        block_rows = _TARGET_BLOCK_BYTES // (LANES * itemsize)
    block_rows = max(sub_tile, (block_rows // sub_tile) * sub_tile)
    block_rows = min(block_rows, pl.cdiv(rows, sub_tile) * sub_tile)

    n_blocks = pl.cdiv(rows, block_rows)
    full_blocks = rows // block_rows                 # blocks needing no mask

    cores = _num_tensorcores() if num_cores is None else int(num_cores)
    if n_blocks < 2:
        cores = 1
    per_core = pl.cdiv(n_blocks, cores)

    has_clamp = cores * per_core > n_blocks
    needs_mask = has_clamp or (n_blocks * block_rows != rows)

    def in_index_map(c, j):
        idx = c * per_core + j
        if has_clamp:
            idx = jnp.minimum(idx, n_blocks - 1)     # never DMA past the array
        return (idx, 0)

    kernel = functools.partial(
        _sq_diff_sum_kernel,
        block_rows=block_rows, per_core=per_core, rows=rows,
        full_blocks=full_blocks, needs_mask=needs_mask)

    block_bytes = block_rows * LANES * itemsize
    vmem_limit = int(min(48 * 1024 * 1024,
                         max(32 * 1024 * 1024, 4 * block_bytes + 8 * 1024 * 1024)))

    if cores == 2:
        dim_sem = (pltpu.CORE_PARALLEL, pltpu.ARBITRARY)
    else:
        dim_sem = (pltpu.ARBITRARY, pltpu.ARBITRARY)

    partials = pl.pallas_call(
        kernel,
        out_shape=jax.ShapeDtypeStruct((cores, SUB, LANES), jnp.float32),
        grid_spec=pltpu.PrefetchScalarGridSpec(
            num_scalar_prefetch=0,
            grid=(cores, per_core),
            in_specs=[
                pl.BlockSpec((block_rows, LANES), in_index_map),
                pl.BlockSpec((block_rows, LANES), in_index_map),
            ],
            out_specs=pl.BlockSpec((1, SUB, LANES), lambda c, j: (c, 0, 0)),
        ),
        compiler_params=pltpu.CompilerParams(
            dimension_semantics=dim_sem,
            vmem_limit_bytes=vmem_limit,
        ),
    )(a, b)

    # Tiny epilogue: one reduce over <= cores*8*128 floats + tail + sqrt.
    total = jnp.sum(partials) + tail_sum
    return jnp.sqrt(total / jnp.float32(n))


if __name__ == "__main__":
    key = jax.random.PRNGKey(0)

    def ref_rmse(x, y):
        xf = x.astype(jnp.float32)
        yf = y.astype(jnp.float32)
        return jnp.sqrt(jnp.mean((xf - yf) ** 2))

    checks = [
        # (shape, dtype, kwargs)
        ((2, 4, 16, 16), jnp.float32, {}),                    # module's NCHW shape, single block
        ((2, 4, 64, 64), jnp.bfloat16, {}),                   # native bf16 streaming
        ((2, 3, 33, 37), jnp.float32, {}),                    # ragged n: aligned prefix + JAX tail
        ((8, 4, 64, 64), jnp.float32, dict(block_rows=96)),   # multi-block, masked last block
        ((8, 4, 64, 64), jnp.float32, dict(block_rows=128)),  # multi-block, exact tiling (hot path only)
        ((4, 7), jnp.float32, {}),                            # tiny-input jnp fast path
    ]

    for i, (shape, dtype, kw) in enumerate(checks):
        key, k1, k2 = jax.random.split(key, 3)
        x = jax.random.normal(k1, shape, dtype=jnp.float32).astype(dtype)
        y = jax.random.normal(k2, shape, dtype=jnp.float32).astype(dtype)
        got = rmse(x, y, **kw)
        jax.block_until_ready(got)
        want = ref_rmse(x, y)
        assert jnp.allclose(got, want, rtol=1e-5, atol=1e-6), (i, shape, dtype, got, want)

    print("KERNEL_OK")
</pallas_src>

<mosaic_0001>
module attributes {stable_mosaic.version = 11 : i64} {
  func.func @_sq_diff_sum_kernel(%arg0: i32, %arg1: i32, %arg2: memref<16x128xf32, #tpu.memory_space<vmem>>, %arg3: memref<16x128xf32, #tpu.memory_space<vmem>>, %arg4: memref<1x8x128xf32, #tpu.memory_space<vmem>>) attributes {dimension_semantics = [#tpu.dimension_semantics<arbitrary>, #tpu.dimension_semantics<arbitrary>], iteration_bounds = array<i64: 1, 1>, scalar_prefetch = 0 : i64, scratch_operands = 0 : i64, tpu.core_type = #tpu.core_type<tc>, window_params = [{transform_indices = @transform_0, window_bounds = array<i64: 16, 128>}, {transform_indices = @transform_1, window_bounds = array<i64: 16, 128>}, {transform_indices = @transform_2, window_bounds = array<i64: 1, 8, 128>}]} {
    %c0_i32 = arith.constant 0 : i32
    %0 = arith.cmpi eq, %arg1, %c0_i32 : i32
    %1 = arith.extui %0 : i1 to i32
    %c0_i32_0 = arith.constant 0 : i32
    %2 = arith.cmpi ne, %1, %c0_i32_0 : i32
    scf.if %2 {
      %cst_10 = arith.constant 0.000000e+00 : f32
      %13 = vector.broadcast %cst_10 : f32 to vector<1x8x128xf32>
      %c0_11 = arith.constant 0 : index
      %c0_12 = arith.constant 0 : index
      %c0_13 = arith.constant 0 : index
      %14 = vector.load %arg4[%c0_11, %c0_12, %c0_13] : memref<1x8x128xf32, #tpu.memory_space<vmem>>, vector<1x8x128xf32>
      tpu.vector_store %arg4[%c0_11, %c0_12, %c0_13], %13 {strides = array<i32>} : memref<1x8x128xf32, #tpu.memory_space<vmem>>, vector<1x8x128xf32>,
    } else {
    }
    %c0 = arith.constant 0 : index
    %c0_1 = arith.constant 0 : index
    %3 = vector.load %arg2[%c0, %c0_1] : memref<16x128xf32, #tpu.memory_space<vmem>>, vector<16x128xf32>
    %c0_2 = arith.constant 0 : index
    %c0_3 = arith.constant 0 : index
    %4 = vector.load %arg3[%c0_2, %c0_3] : memref<16x128xf32, #tpu.memory_space<vmem>>, vector<16x128xf32>
    %5 = arith.subf %3, %4 : vector<16x128xf32>
    %6 = arith.mulf %5, %5 : vector<16x128xf32>
    %c0_4 = arith.constant 0 : index
    %c0_5 = arith.constant 0 : index
    %c0_6 = arith.constant 0 : index
    %7 = vector.load %arg4[%c0_4, %c0_5, %c0_6] : memref<1x8x128xf32, #tpu.memory_space<vmem>>, vector<1x8x128xf32>
    %8 = vector.shape_cast %6 : vector<16x128xf32> to vector<2x8x128xf32>
    %cst = arith.constant dense<0.000000e+00> : vector<8x128xf32>
    %9 = vector.multi_reduction <add>, %8, %cst [0] : vector<2x8x128xf32> to vector<8x128xf32>
    %10 = vector.shape_cast %9 : vector<8x128xf32> to vector<1x8x128xf32>
    %11 = arith.addf %7, %10 : vector<1x8x128xf32>
    %c0_7 = arith.constant 0 : index
    %c0_8 = arith.constant 0 : index
    %c0_9 = arith.constant 0 : index
    %12 = vector.load %arg4[%c0_7, %c0_8, %c0_9] : memref<1x8x128xf32, #tpu.memory_space<vmem>>, vector<1x8x128xf32>
    tpu.vector_store %arg4[%c0_7, %c0_8, %c0_9], %11 {strides = array<i32>} : memref<1x8x128xf32, #tpu.memory_space<vmem>>, vector<1x8x128xf32>,
    return
  }
  func.func @transform_0(%arg0: i32, %arg1: i32) -> (i32, i32) {
    %c1_i32 = arith.constant 1 : i32
    %0 = arith.muli %arg0, %c1_i32 : i32
    %1 = arith.addi %0, %arg1 : i32
    %c0_i32 = arith.constant 0 : i32
    %c0_i32_0 = arith.constant 0 : i32
    return %1, %c0_i32 : i32, i32
  }
  func.func @transform_1(%arg0: i32, %arg1: i32) -> (i32, i32) {
    %c1_i32 = arith.constant 1 : i32
    %0 = arith.muli %arg0, %c1_i32 : i32
    %1 = arith.addi %0, %arg1 : i32
    %c0_i32 = arith.constant 0 : i32
    %c0_i32_0 = arith.constant 0 : i32
    return %1, %c0_i32 : i32, i32
  }
  func.func @transform_2(%arg0: i32, %arg1: i32) -> (i32, i32, i32) {
    %c0_i32 = arith.constant 0 : i32
    %c0_i32_0 = arith.constant 0 : i32
    %c0_i32_1 = arith.constant 0 : i32
    return %arg0, %c0_i32, %c0_i32_0 : i32, i32, i32
  }
}

</mosaic_0001>

<bundles_post_ra>
// kernel: tpu_custom_call.1
= control target key start
LH: loop header
LB: loop body
LE: loop exit
PB: predicated region body
PF: predicated region fallthrough
CT: control target
= control target key end

     0   :  { %7 = vsyncpa [#allocation3], 0  ;;  %s204_s0 = inlined_call_operand.hbm [shape: f32[16,128], index: 0, kind: input, shape index: {}]   ;;  %s205_s1 = inlined_call_operand.hbm [shape: f32[16,128], index: 1, kind: input, shape index: {}]   ;;  %s206_s2 = inlined_call_operand.hbm [shape: f32[1,8,128], index: 2, kind: output, shape index: {}]  }
   0x1   :  { %8 = vsyncpa [#allocation6], 0 }
   0x2   :  { %9 = vsyncpa [#allocation4], 0  ;;  %s18_s11 = sshll.u32 %s204_s0, 4  ;;  %s175_s12 = smov [#allocation2]   ;;  %s19_s11 = int_to_ptr.hbm [resolvable:$true] %s18_s11 }
   0x3   :  { %s20_s13 = sshll.u32 %s175_s12, 4  ;;  %s35_s16 = sshll.u32 %s205_s1, 4  ;;  %s21_s13 = int_to_ptr.vmem [resolvable:$true] %s20_s13  ;;  %s36_s16 = int_to_ptr.hbm [resolvable:$true] %s35_s16 }
   0x4   :  { %s176_s17 = smov 128   ;;  %s177_s18 = smov 8  }
   0x5   :  { %26 = dma.hbm_to_vmem [thread:$0]  %s19_s11, 256, %s21_s13, [#allocation3], %s176_s17, %s176_s17, %s177_s18  }
   0x6   :  { %s178_s19 = smov [#allocation5]  }
   0x7   :  { %s37_s20 = sshll.u32 %s178_s19, 4  ;;  %s38_s20 = int_to_ptr.vmem [resolvable:$true] %s37_s20 }
   0x8   :  { %43 = dma.hbm_to_vmem [thread:$0]  %s36_s16, 256, %s38_s20, [#allocation6], %s176_s17, %s176_s17, %s177_s18  }
   0x9   :  { %169 = dma.done.wait [#allocation3], 256  }
   0xa   :  { %170 = vsyncadd [#allocation3], 4294967040 }
   0xb   :  { %171 = dma.done.wait [#allocation6], 256  }
   0xc   :  { %172 = vsyncadd [#allocation6], 4294967040  ;;  %v61_v0 = vld [vmem:[#allocation2] sm:$0xff]  ;;  %v62_v1 = vld [vmem:[#allocation2 + $0x8] sm:$0xff]  ;;  %s179_s0 = smov [#allocation7]   ;;  %s80_s23 = sshll.u32 %s206_s2, 4  ;;  %s81_s23 = int_to_ptr.hbm [resolvable:$true] %s80_s23 }
   0xd   :  { %v63_v2 = vld [vmem:[#allocation5] sm:$0xff]  ;;  %v64_v3 = vld [vmem:[#allocation5 + $0x8] sm:$0xff]  ;;  %s78_s1 = sshll.u32 %s179_s0, 4  ;;  %s79_s1 = int_to_ptr.vmem [resolvable:$true] %s78_s1 }
   0xe   :  { %v65_v4 = vsub.f32 %v61_v0, %v63_v2  ;;  %v66_v5 = vsub.f32 %v62_v1, %v64_v3 }
  0x10   :  { %v67_v6 = vmul.f32 %v65_v4, %v65_v4  ;;  %v68_v7 = vmul.f32 %v66_v5, %v66_v5 }
  0x12   :  { %v70_v8 = vadd.f32 %v68_v7, %v67_v6 }
  0x14   :  { %72 = vst [vmem:[#allocation7] sm:$0xff] %v70_v8 }
  0x15   :  { %83 = dma.vmem_to_hbm [thread:$0]  %s79_s1, 128, %s81_s23, [#allocation4]  }
  0x16   :  { %173 = dma.done.wait [#allocation4], 128  }
  0x17   :  { %174 = vsyncadd [#allocation4], 4294967168 }
  0x18   :  { %88 = vsyncpa [#allocation3], 1 }
  0x19   :  { %89 = vsyncpa [#allocation6], 1 }
  0x1a   :  { %90 = vsyncpa [#allocation4], 1 }

</bundles_post_ra>
